<compile_context>
chip_gen: v7x
topology: tpu7x:2x2x1
jax: 0.10.0
libtpu: 0.0.40
codegen_flags: <defaults>
</compile_context>

<pallas_src>
import functools

import jax
import jax.numpy as jnp
from jax import lax
from jax.experimental import pallas as pl
from jax.experimental.pallas import tpu as pltpu


def _enc_attn_kernel(x1_ref, x2_ref, w1_ref, w2_ref, b_ref, gamma_ref,
                     out_ref, q_buf, k_buf, v_buf, *,
                     c1, c8p, tq, n_valid, n_pad):
    qi = pl.program_id(1)

    # ---- per-batch: fused stacked projection (q/k/v) into bf16 VMEM scratch.
    @pl.when(qi == 0)
    def _project():
        x1b = x1_ref[0].astype(jnp.bfloat16)          # (C1, NPAD)
        x2b = x2_ref[0].astype(jnp.bfloat16)          # (C2, NPAD)
        proj = (jnp.dot(w1_ref[...], x1b, preferred_element_type=jnp.float32)
                + jnp.dot(w2_ref[...], x2b, preferred_element_type=jnp.float32)
                + b_ref[...])                         # (CTOT, NPAD) f32
        q_buf[...] = proj[:c8p].astype(jnp.bfloat16)          # (C8P, NPAD)
        k_buf[...] = proj[c8p:2 * c8p].astype(jnp.bfloat16)   # (C8P, NPAD)
        v_buf[...] = proj[2 * c8p:].astype(jnp.bfloat16)      # (C,   NPAD)

    q0 = pl.multiple_of(qi * tq, tq)                  # lane-aligned tile start
    q_tile = q_buf[:, pl.ds(q0, tq)]                  # (C8P, TQ) bf16

    # energy_t[j, i] = <k[:, j], q[:, i]>  -> (NPAD, TQ); keys on sublanes.
    energy = lax.dot_general(k_buf[...], q_tile, (((0,), (0,)), ((), ())),
                             preferred_element_type=jnp.float32)

    if n_valid < n_pad:
        # Mask padded key rows out of the softmax.
        key_idx = lax.broadcasted_iota(jnp.int32, (n_pad, tq), 0)
        energy = jnp.where(key_idx < n_valid, energy, -1e30)

    # Softmax along keys (axis 0) with deferred normalization.
    m = jnp.max(energy, axis=0, keepdims=True)        # (1, TQ)
    p = jnp.exp(energy - m)                           # (NPAD, TQ) f32
    l = jnp.sum(p, axis=0, keepdims=True)             # (1, TQ)  f32

    # out[c, i] = sum_j v[c, j] * p[j, i]  -- natural MXU form, unnormalized p.
    pv = jnp.dot(v_buf[...], p.astype(jnp.bfloat16),
                 preferred_element_type=jnp.float32)  # (C, TQ)
    attn_out = pv * pl.reciprocal(l, approx=True)     # normalize the small slab

    g = gamma_ref[0]
    scaled = g * attn_out
    # Residual add + store in two channel slices (no concat of x in VMEM).
    out_ref[0, :c1, :] = scaled[:c1] + x1_ref[0, :, pl.ds(q0, tq)]
    out_ref[0, c1:, :] = scaled[c1:] + x2_ref[0, :, pl.ds(q0, tq)]


def enc_forward(KL, distortionKL, params):
    """enc.forward: fusionKL = cat([KL, distortionKL], dim=1); selfAttention(fusionKL)."""
    wq, bq, wk, bk, wv, bv, gamma = params
    B, C1, H, W = KL.shape
    C2 = distortionKL.shape[1]
    C = C1 + C2
    C8 = C // 8
    N = H * W
    NPAD = max(128, ((N + 127) // 128) * 128)     # lane-dense pixel axis
    C8P = max(8, ((C8 + 7) // 8) * 8)             # sublane-aligned q/k rows
    CTOT = 2 * C8P + C

    # --- stack q/k/v weights (pad q/k rows to C8P), split columns at C1 so the
    #     kernel never concatenates channels.
    def _pad_rows(w, b, rows):
        wpad = jnp.zeros((rows, C), jnp.float32).at[: w.shape[0]].set(
            w.astype(jnp.float32))
        bpad = jnp.zeros((rows, 1), jnp.float32).at[: b.shape[0], 0].set(
            b.astype(jnp.float32))
        return wpad, bpad

    wqp, bqp = _pad_rows(wq, bq, C8P)
    wkp, bkp = _pad_rows(wk, bk, C8P)
    w_stacked = jnp.concatenate([wqp, wkp, wv.astype(jnp.float32)], axis=0)
    b_stacked = jnp.concatenate(
        [bqp, bkp, bv.reshape(C, 1).astype(jnp.float32)], axis=0)
    w1 = w_stacked[:, :C1].astype(jnp.bfloat16)   # (CTOT, C1)
    w2 = w_stacked[:, C1:].astype(jnp.bfloat16)   # (CTOT, C2)

    # --- flatten spatial dims, pad pixel axis to NPAD (no HBM concat of x).
    x1 = KL.reshape(B, C1, N).astype(jnp.float32)
    x2 = distortionKL.reshape(B, C2, N).astype(jnp.float32)
    if NPAD != N:
        x1 = jnp.pad(x1, ((0, 0), (0, 0), (0, NPAD - N)))
        x2 = jnp.pad(x2, ((0, 0), (0, 0), (0, NPAD - N)))
    gamma_s = gamma.reshape(1).astype(jnp.float32)

    # --- query-tile size: largest of (512, 256, 128) dividing NPAD.
    TQ = 128
    for t in (512, 256, 128):
        if NPAD % t == 0:
            TQ = t
            break

    # --- generation-aware scoped-VMEM cap (48 MiB on v7x, 96 MiB on v5e/v6e).
    try:
        phys_vmem = int(pltpu.get_tpu_info().vmem_capacity_bytes)
    except Exception:
        phys_vmem = 64 * 2 ** 20      # conservative: v7x per-TC physical VMEM
    vmem_cap = phys_vmem * 3 // 4

    def _vmem_estimate(tq):
        slabs = 3 * NPAD * tq * 4                       # energy f32 + exp f32/bf16
        io = 2 * 2 * C * NPAD * 4 + 2 * C * tq * 4      # dbuf inputs + dbuf out
        scratch = CTOT * NPAD * 2                       # bf16 q/k/v caches
        weights = 2 * CTOT * C * 2 + CTOT * 4
        return slabs + io + scratch + weights

    while TQ > 128 and _vmem_estimate(TQ) > vmem_cap:
        TQ //= 2
    vmem_limit = int(min(vmem_cap, max(int(1.5 * _vmem_estimate(TQ)),
                                       16 * 2 ** 20)))
    NQ = NPAD // TQ

    cost = pl.CostEstimate(
        flops=int(2 * B * (CTOT * C * NPAD + (C8P + C) * NPAD * NPAD)),
        transcendentals=int(B * NPAD * NPAD),
        bytes_accessed=int(2 * B * C * NPAD * 4 + B * C * NPAD * 4
                           + 2 * CTOT * C * 2 + CTOT * 4),
    )

    kernel = functools.partial(_enc_attn_kernel, c1=C1, c8p=C8P, tq=TQ,
                               n_valid=N, n_pad=NPAD)

    out = pl.pallas_call(
        kernel,
        out_shape=jax.ShapeDtypeStruct((B, C, NPAD), jnp.float32),
        grid_spec=pltpu.PrefetchScalarGridSpec(
            num_scalar_prefetch=0,
            grid=(B, NQ),
            in_specs=[
                pl.BlockSpec((1, C1, NPAD), lambda b, qi: (b, 0, 0)),  # KL slab
                pl.BlockSpec((1, C2, NPAD), lambda b, qi: (b, 0, 0)),  # distortionKL slab
                pl.BlockSpec((CTOT, C1), lambda b, qi: (0, 0)),        # W cols for x1 (bf16)
                pl.BlockSpec((CTOT, C2), lambda b, qi: (0, 0)),        # W cols for x2 (bf16)
                pl.BlockSpec((CTOT, 1), lambda b, qi: (0, 0)),         # stacked bias (f32)
                pl.BlockSpec(memory_space=pltpu.MemorySpace.SMEM),     # gamma scalar
            ],
            out_specs=pl.BlockSpec((1, C, TQ), lambda b, qi: (b, 0, qi)),
            scratch_shapes=[
                pltpu.VMEM((C8P, NPAD), jnp.bfloat16),   # q cache
                pltpu.VMEM((C8P, NPAD), jnp.bfloat16),   # k cache
                pltpu.VMEM((C, NPAD), jnp.bfloat16),     # v cache
            ],
        ),
        compiler_params=pltpu.CompilerParams(
            dimension_semantics=("parallel", "arbitrary"),
            vmem_limit_bytes=vmem_limit,
        ),
        cost_estimate=cost,
    )(x1, x2, w1, w2, b_stacked, gamma_s)

    return out[:, :, :N].reshape(B, C, H, W)


def make_params(ch, key):
    """Deterministic param init. Shapes follow selfAttention.__init__(in_dim=ch)."""
    c8 = ch // 8
    ks = jax.random.split(key, 6)
    scale = 0.1
    wq = scale * jax.random.normal(ks[0], (c8, ch), jnp.float32)
    bq = scale * jax.random.normal(ks[1], (c8,), jnp.float32)
    wk = scale * jax.random.normal(ks[2], (c8, ch), jnp.float32)
    bk = scale * jax.random.normal(ks[3], (c8,), jnp.float32)
    wv = scale * jax.random.normal(ks[4], (ch, ch), jnp.float32)
    bv = scale * jax.random.normal(ks[5], (ch,), jnp.float32)
    # PyTorch inits gamma to 0 (output == input); use 0.5 so the attention path
    # is actually exercised in the numerics below.
    gamma = jnp.array([0.5], jnp.float32)
    return (wq, bq, wk, bk, wv, bv, gamma)


def enc_reference(KL, distortionKL, params):
    """Plain-JAX f32 reference mirroring the PyTorch forward."""
    wq, bq, wk, bk, wv, bv, gamma = params
    x = jnp.concatenate([KL, distortionKL], axis=1)
    B, C, H, W = x.shape
    N = H * W
    xf = x.reshape(B, C, N)
    q = jnp.einsum('oc,bcn->bon', wq, xf) + bq[None, :, None]
    k = jnp.einsum('oc,bcn->bon', wk, xf) + bk[None, :, None]
    v = jnp.einsum('oc,bcn->bon', wv, xf) + bv[None, :, None]
    energy = jnp.einsum('bci,bcj->bij', q, k)
    attn = jax.nn.softmax(energy, axis=-1)
    out = jnp.einsum('bcj,bij->bci', v, attn)
    out = gamma[0] * out + xf
    return out.reshape(B, C, H, W)


if __name__ == "__main__":
    key = jax.random.PRNGKey(0)
    k_kl, k_dist, k_par = jax.random.split(key, 3)

    B, H, W = 2, 8, 8
    ch = 16                     # total channels after concat; selfAttention(in_dim=ch)
    ch_half = ch // 2

    KL = jax.random.normal(k_kl, (B, ch_half, H, W), jnp.float32)
    distortionKL = jax.random.normal(k_dist, (B, ch_half, H, W), jnp.float32)
    params = make_params(ch, k_par)

    out = enc_forward(KL, distortionKL, params)
    out = jax.block_until_ready(out)

    ref = enc_reference(KL, distortionKL, params)
    assert out.shape == (B, ch, H, W)
    # bf16 MXU operands + approx reciprocal -> slightly looser tolerance than f32
    assert jnp.allclose(out, ref, atol=3e-2, rtol=3e-2)

    print("KERNEL_OK")
</pallas_src>

<mosaic_0001>
module attributes {stable_mosaic.version = 11 : i64} {
  func.func @_enc_attn_kernel(%arg0: i32, %arg1: i32, %arg2: memref<1x8x128xf32, #tpu.memory_space<vmem>>, %arg3: memref<1x8x128xf32, #tpu.memory_space<vmem>>, %arg4: memref<32x8xbf16, #tpu.memory_space<vmem>>, %arg5: memref<32x8xbf16, #tpu.memory_space<vmem>>, %arg6: memref<32x1xf32, #tpu.memory_space<vmem>>, %arg7: memref<1xf32, #tpu.memory_space<smem>>, %arg8: memref<1x16x128xf32, #tpu.memory_space<vmem>>, %arg9: memref<8x128xbf16, #tpu.memory_space<vmem>>, %arg10: memref<8x128xbf16, #tpu.memory_space<vmem>>, %arg11: memref<16x128xbf16, #tpu.memory_space<vmem>>) attributes {dimension_semantics = [#tpu.dimension_semantics<parallel>, #tpu.dimension_semantics<arbitrary>], iteration_bounds = array<i64: 2, 1>, scalar_prefetch = 0 : i64, scratch_operands = 3 : i64, tpu.core_type = #tpu.core_type<tc>, window_params = [{transform_indices = @transform_0, window_bounds = array<i64: 1, 8, 128>}, {transform_indices = @transform_1, window_bounds = array<i64: 1, 8, 128>}, {pipeline_mode = #tpu.pipeline_mode<synchronous>, transform_indices = @transform_2, window_bounds = array<i64: 32, 8>}, {pipeline_mode = #tpu.pipeline_mode<synchronous>, transform_indices = @transform_3, window_bounds = array<i64: 32, 8>}, {pipeline_mode = #tpu.pipeline_mode<synchronous>, transform_indices = @transform_4, window_bounds = array<i64: 32, 1>}, {transform_indices = @transform_5, window_bounds = array<i64: 1>}, {transform_indices = @transform_6, window_bounds = array<i64: 1, 16, 128>}]} {
    %c0_i32 = arith.constant 0 : i32
    %0 = arith.cmpi eq, %arg1, %c0_i32 : i32
    %1 = arith.extui %0 : i1 to i32
    %c0_i32_0 = arith.constant 0 : i32
    %2 = arith.cmpi ne, %1, %c0_i32_0 : i32
    scf.if %2 {
      %c0_19 = arith.constant 0 : index
      %c0_20 = arith.constant 0 : index
      %c0_21 = arith.constant 0 : index
      %46 = vector.load %arg2[%c0_19, %c0_20, %c0_21] : memref<1x8x128xf32, #tpu.memory_space<vmem>>, vector<1x8x128xf32>
      %47 = vector.shape_cast %46 : vector<1x8x128xf32> to vector<8x128xf32>
      %48 = arith.truncf %47 : vector<8x128xf32> to vector<8x128xbf16>
      %c0_22 = arith.constant 0 : index
      %c0_23 = arith.constant 0 : index
      %c0_24 = arith.constant 0 : index
      %49 = vector.load %arg3[%c0_22, %c0_23, %c0_24] : memref<1x8x128xf32, #tpu.memory_space<vmem>>, vector<1x8x128xf32>
      %50 = vector.shape_cast %49 : vector<1x8x128xf32> to vector<8x128xf32>
      %51 = arith.truncf %50 : vector<8x128xf32> to vector<8x128xbf16>
      %c0_25 = arith.constant 0 : index
      %c0_26 = arith.constant 0 : index
      %52 = vector.load %arg4[%c0_25, %c0_26] : memref<32x8xbf16, #tpu.memory_space<vmem>>, vector<32x8xbf16>
      %cst_27 = arith.constant dense<0.000000e+00> : vector<32x128xf32>
      %53 = tpu.matmul %52, %48, %cst_27 {dimension_numbers = #tpu.dot_dimension_numbers<[1], [0], [0], [1], [0, 0, 1, 1], [], []>} : vector<32x8xbf16>, vector<8x128xbf16>, vector<32x128xf32> -> vector<32x128xf32>
      %c0_28 = arith.constant 0 : index
      %c0_29 = arith.constant 0 : index
      %54 = vector.load %arg5[%c0_28, %c0_29] : memref<32x8xbf16, #tpu.memory_space<vmem>>, vector<32x8xbf16>
      %cst_30 = arith.constant dense<0.000000e+00> : vector<32x128xf32>
      %55 = tpu.matmul %54, %51, %cst_30 {dimension_numbers = #tpu.dot_dimension_numbers<[1], [0], [0], [1], [0, 0, 1, 1], [], []>} : vector<32x8xbf16>, vector<8x128xbf16>, vector<32x128xf32> -> vector<32x128xf32>
      %56 = arith.addf %53, %55 : vector<32x128xf32>
      %c0_31 = arith.constant 0 : index
      %c0_32 = arith.constant 0 : index
      %57 = vector.load %arg6[%c0_31, %c0_32] : memref<32x1xf32, #tpu.memory_space<vmem>>, vector<32x1xf32>
      %58 = vector.broadcast %57 : vector<32x1xf32> to vector<32x128xf32>
      %59 = arith.addf %56, %58 : vector<32x128xf32>
      %60 = vector.extract_strided_slice %59 {offsets = [0, 0], sizes = [8, 128], strides = [1, 1]} : vector<32x128xf32> to vector<8x128xf32>
      %61 = arith.truncf %60 : vector<8x128xf32> to vector<8x128xbf16>
      %c0_33 = arith.constant 0 : index
      %c0_34 = arith.constant 0 : index
      %62 = vector.load %arg9[%c0_33, %c0_34] : memref<8x128xbf16, #tpu.memory_space<vmem>>, vector<8x128xbf16>
      tpu.vector_store %arg9[%c0_33, %c0_34], %61 {strides = array<i32>} : memref<8x128xbf16, #tpu.memory_space<vmem>>, vector<8x128xbf16>,
      %63 = vector.extract_strided_slice %59 {offsets = [8, 0], sizes = [8, 128], strides = [1, 1]} : vector<32x128xf32> to vector<8x128xf32>
      %64 = arith.truncf %63 : vector<8x128xf32> to vector<8x128xbf16>
      %c0_35 = arith.constant 0 : index
      %c0_36 = arith.constant 0 : index
      %65 = vector.load %arg10[%c0_35, %c0_36] : memref<8x128xbf16, #tpu.memory_space<vmem>>, vector<8x128xbf16>
      tpu.vector_store %arg10[%c0_35, %c0_36], %64 {strides = array<i32>} : memref<8x128xbf16, #tpu.memory_space<vmem>>, vector<8x128xbf16>,
      %66 = vector.extract_strided_slice %59 {offsets = [16, 0], sizes = [16, 128], strides = [1, 1]} : vector<32x128xf32> to vector<16x128xf32>
      %67 = arith.truncf %66 : vector<16x128xf32> to vector<16x128xbf16>
      %c0_37 = arith.constant 0 : index
      %c0_38 = arith.constant 0 : index
      %68 = vector.load %arg11[%c0_37, %c0_38] : memref<16x128xbf16, #tpu.memory_space<vmem>>, vector<16x128xbf16>
      tpu.vector_store %arg11[%c0_37, %c0_38], %67 {strides = array<i32>} : memref<16x128xbf16, #tpu.memory_space<vmem>>, vector<16x128xbf16>,
    } else {
    }
    %c128_i32 = arith.constant 128 : i32
    %3 = arith.muli %arg1, %c128_i32 : i32
    %4 = tpu.assume_multiple %3, 128 : i32
    %c0 = arith.constant 0 : index
    %5 = arith.index_cast %4 : i32 to index
    %6 = vector.load %arg9[%c0, %5] : memref<8x128xbf16, #tpu.memory_space<vmem>>, vector<8x128xbf16>
    %c0_1 = arith.constant 0 : index
    %c0_2 = arith.constant 0 : index
    %7 = vector.load %arg10[%c0_1, %c0_2] : memref<8x128xbf16, #tpu.memory_space<vmem>>, vector<8x128xbf16>
    %cst = arith.constant dense<0.000000e+00> : vector<128x128xf32>
    %8 = tpu.matmul %7, %6, %cst {dimension_numbers = #tpu.dot_dimension_numbers<[0], [0], [1], [1], [0, 1, 1, 1], [], []>} : vector<8x128xbf16>, vector<8x128xbf16>, vector<128x128xf32> -> vector<128x128xf32>
    %9 = tpu.iota {dimensions = array<i32: 0>} : vector<128x128xi32>
    %c64_i32 = arith.constant 64 : i32
    %10 = vector.broadcast %c64_i32 : i32 to vector<128x128xi32>
    %11 = arith.cmpi slt, %9, %10 : vector<128x128xi32>
    %cst_3 = arith.constant -1.000000e+30 : f32
    %12 = vector.broadcast %cst_3 : f32 to vector<128x128xf32>
    %13 = arith.select %11, %8, %12 : vector<128x128xi1>, vector<128x128xf32>
    %cst_4 = arith.constant dense<0xFF800000> : vector<128xf32>
    %14 = vector.multi_reduction <maximumf>, %13, %cst_4 [0] : vector<128x128xf32> to vector<128xf32>
    %15 = vector.shape_cast %14 : vector<128xf32> to vector<1x128xf32>
    %16 = vector.broadcast %15 : vector<1x128xf32> to vector<128x128xf32>
    %17 = arith.subf %13, %16 : vector<128x128xf32>
    %18 = math.exp %17 : vector<128x128xf32>
    %cst_5 = arith.constant dense<0.000000e+00> : vector<128xf32>
    %19 = vector.multi_reduction <add>, %18, %cst_5 [0] : vector<128x128xf32> to vector<128xf32>
    %20 = vector.shape_cast %19 : vector<128xf32> to vector<1x128xf32>
    %c0_6 = arith.constant 0 : index
    %c0_7 = arith.constant 0 : index
    %21 = vector.load %arg11[%c0_6, %c0_7] : memref<16x128xbf16, #tpu.memory_space<vmem>>, vector<16x128xbf16>
    %22 = arith.truncf %18 : vector<128x128xf32> to vector<128x128xbf16>
    %cst_8 = arith.constant dense<0.000000e+00> : vector<16x128xf32>
    %23 = tpu.matmul %21, %22, %cst_8 {dimension_numbers = #tpu.dot_dimension_numbers<[1], [0], [0], [1], [0, 0, 1, 1], [], []>} : vector<16x128xbf16>, vector<128x128xbf16>, vector<16x128xf32> -> vector<16x128xf32>
    %24 = tpu.reciprocal %20 {approx = true} : vector<1x128xf32> -> vector<1x128xf32>
    %25 = vector.broadcast %24 : vector<1x128xf32> to vector<16x128xf32>
    %26 = arith.mulf %23, %25 : vector<16x128xf32>
    %c0_9 = arith.constant 0 : index
    %27 = memref.load %arg7[%c0_9] : memref<1xf32, #tpu.memory_space<smem>>
    %28 = vector.broadcast %27 : f32 to vector<16x128xf32>
    %29 = arith.mulf %28, %26 : vector<16x128xf32>
    %30 = vector.extract_strided_slice %29 {offsets = [0, 0], sizes = [8, 128], strides = [1, 1]} : vector<16x128xf32> to vector<8x128xf32>
    %c0_10 = arith.constant 0 : index
    %c0_11 = arith.constant 0 : index
    %31 = arith.index_cast %4 : i32 to index
    %32 = vector.load %arg2[%c0_10, %c0_11, %31] : memref<1x8x128xf32, #tpu.memory_space<vmem>>, vector<1x8x128xf32>
    %33 = vector.shape_cast %32 : vector<1x8x128xf32> to vector<8x128xf32>
    %34 = arith.addf %30, %33 : vector<8x128xf32>
    %c0_12 = arith.constant 0 : index
    %c0_13 = arith.constant 0 : index
    %c0_14 = arith.constant 0 : index
    %35 = vector.load %arg8[%c0_12, %c0_13, %c0_14] : memref<1x16x128xf32, #tpu.memory_space<vmem>>, vector<1x8x128xf32>
    %36 = vector.shape_cast %35 : vector<1x8x128xf32> to vector<8x128xf32>
    %37 = vector.shape_cast %34 : vector<8x128xf32> to vector<1x8x128xf32>
    tpu.vector_store %arg8[%c0_12, %c0_13, %c0_14], %37 {strides = array<i32>} : memref<1x16x128xf32, #tpu.memory_space<vmem>>, vector<1x8x128xf32>,
    %38 = vector.extract_strided_slice %29 {offsets = [8, 0], sizes = [8, 128], strides = [1, 1]} : vector<16x128xf32> to vector<8x128xf32>
    %c0_15 = arith.constant 0 : index
    %c0_16 = arith.constant 0 : index
    %39 = arith.index_cast %4 : i32 to index
    %40 = vector.load %arg3[%c0_15, %c0_16, %39] : memref<1x8x128xf32, #tpu.memory_space<vmem>>, vector<1x8x128xf32>
    %41 = vector.shape_cast %40 : vector<1x8x128xf32> to vector<8x128xf32>
    %42 = arith.addf %38, %41 : vector<8x128xf32>
    %c0_17 = arith.constant 0 : index
    %c8 = arith.constant 8 : index
    %c0_18 = arith.constant 0 : index
    %43 = vector.load %arg8[%c0_17, %c8, %c0_18] : memref<1x16x128xf32, #tpu.memory_space<vmem>>, vector<1x8x128xf32>
    %44 = vector.shape_cast %43 : vector<1x8x128xf32> to vector<8x128xf32>
    %45 = vector.shape_cast %42 : vector<8x128xf32> to vector<1x8x128xf32>
    tpu.vector_store %arg8[%c0_17, %c8, %c0_18], %45 {strides = array<i32>} : memref<1x16x128xf32, #tpu.memory_space<vmem>>, vector<1x8x128xf32>,
    return
  }
  func.func @transform_0(%arg0: i32, %arg1: i32) -> (i32, i32, i32) {
    %c0_i32 = arith.constant 0 : i32
    %c0_i32_0 = arith.constant 0 : i32
    %c0_i32_1 = arith.constant 0 : i32
    return %arg0, %c0_i32, %c0_i32_0 : i32, i32, i32
  }
  func.func @transform_1(%arg0: i32, %arg1: i32) -> (i32, i32, i32) {
    %c0_i32 = arith.constant 0 : i32
    %c0_i32_0 = arith.constant 0 : i32
    %c0_i32_1 = arith.constant 0 : i32
    return %arg0, %c0_i32, %c0_i32_0 : i32, i32, i32
  }
  func.func @transform_2(%arg0: i32, %arg1: i32) -> (i32, i32) {
    %c0_i32 = arith.constant 0 : i32
    %c0_i32_0 = arith.constant 0 : i32
    %c0_i32_1 = arith.constant 0 : i32
    return %c0_i32, %c0_i32_0 : i32, i32
  }
  func.func @transform_3(%arg0: i32, %arg1: i32) -> (i32, i32) {
    %c0_i32 = arith.constant 0 : i32
    %c0_i32_0 = arith.constant 0 : i32
    %c0_i32_1 = arith.constant 0 : i32
    return %c0_i32, %c0_i32_0 : i32, i32
  }
  func.func @transform_4(%arg0: i32, %arg1: i32) -> (i32, i32) {
    %c0_i32 = arith.constant 0 : i32
    %c0_i32_0 = arith.constant 0 : i32
    %c0_i32_1 = arith.constant 0 : i32
    return %c0_i32, %c0_i32_0 : i32, i32
  }
  func.func @transform_5(%arg0: i32, %arg1: i32) -> i32 {
    %c0_i32 = arith.constant 0 : i32
    %c0_i32_0 = arith.constant 0 : i32
    return %c0_i32 : i32
  }
  func.func @transform_6(%arg0: i32, %arg1: i32) -> (i32, i32, i32) {
    %c0_i32 = arith.constant 0 : i32
    %c0_i32_0 = arith.constant 0 : i32
    return %arg0, %c0_i32, %arg1 : i32, i32, i32
  }
}

</mosaic_0001>

<bundles_post_ra>
// kernel: tpu_custom_call.1
= control target key start
LH: loop header
LB: loop body
LE: loop exit
PB: predicated region body
PF: predicated region fallthrough
CT: control target
= control target key end

     0   :  { %s1433_s0 = inlined_call_operand.vmem [shape: f32[2,8,128], index: 0, kind: input, shape index: {}]   ;;  %s1434_s1 = inlined_call_operand.vmem [shape: f32[2,8,128], index: 1, kind: input, shape index: {}]   ;;  %s1435_s2 = inlined_call_operand.vmem [shape: bf16[32,8], index: 2, kind: input, shape index: {}]   ;;  %s1436_s3 = inlined_call_operand.vmem [shape: bf16[32,8], index: 3, kind: input, shape index: {}]   ;;  %s1437_s4 = inlined_call_operand.vmem [shape: f32[32,1], index: 4, kind: input, shape index: {}]   ;;  %s1438_s5 = inlined_call_operand.<no memory space> [shape: f32[1], index: 5, kind: input, shape index: {}]   ;;  %s1439_s6 = inlined_call_operand.hbm [shape: f32[2,16,128], index: 6, kind: output, shape index: {}]  }
   0x1   :  { %11 = sst [smem:[#allocation5]] %s1438_s5 }
   0x2   :  { %12 = vsyncpa [#allocation7], 0 }
   0x3   :  { %14 = vsyncpa [#allocation7 + $0x1], 0  ;;  %s1245_s23 = smov 0   ;;  %s1247_s24 = smov 0  }
   0x4   :  { %s1249_s25 = smov 0   ;;  %s1251_s26 = smov 0  }
   0x5   :  { %s1253_s27 = smov 0   ;;  %s1255_s28 = smov 0  }
   0x6 LB: > { %s924_s5 = sadd.s32 4294967295, %s1199_s28   ;;  %s925_s29 = sadd.s32 4294967294, %s1199_s28   ;;  %s1199_s28 = sphi %s1255_s28, %s20_s28   ;;  %s1195_s27 = sphi %s1253_s27, %s1446_s27   ;;  %s1191_s26 = sphi %s1251_s26, %s1445_s26   ;;  %s1187_s25 = sphi %s1249_s25, %s1444_s25   ;;  %s1183_s24 = sphi %s1247_s24, %s1443_s24   ;;  %s1179_s23 = sphi %s1245_s23, %s1442_s23  }
   0x7   : > { %s32_s30 = sadd.s32 1, %s1195_s27  ;;  %s177_s7 = sadd.s32 1, %s1187_s25 }
   0x8   : > { %p34_p0 = scmp.ge.s32.totalorder %s32_s30, 2  ;;  %p187_p1 = scmp.ne.s32.totalorder %s1187_s25, %s1183_s24 }
   0x9   : > { %p188_p2 = scmp.eq.s32.totalorder %s924_s5, 1  ;;  %p193_p3 = scmp.ne.s32.totalorder %s1183_s24, %s1179_s23 }
   0xa   : > { %s1448_s30 = smov (%p34_p0, %s32_s30), 0  ;;  %p194_p5 = scmp.eq.s32.totalorder %s925_s29, 1 }
   0xb   : > { %p1285_p4 = por %p188_p2, %p187_p1  ;;  %s172_s9 = ssub.s32 %s1195_s27, %s1448_s30 }
   0xc   : > { %p928_p6 = scmp.ge.s32.totalorder %s1199_s28, 1  ;;  %p175_p7 = scmp.eq.s32.totalorder %s172_s9, 0 }
   0xd   : > { %p1292_p8 = por %p194_p5, %p193_p3  ;;  %p238_p9 = scmp.lt.s32.totalorder %s1199_s28, 3 }
   0xe   : > { %s1298_s11 = scalar_select %p175_p7, %s1187_s25, %s177_s7  }
   0xf   : > { %p239_p10 = pnand %p928_p6, %p238_p9 }
  0x10   : > { %p271_p11 = scmp.lt.s32.totalorder (!%p239_p10), %s1191_s26, 1  ;;  %v1097_v0 = vld [vmem:[%s1436_s3] sm:$0xff] (!%p239_p10)   ;;  %vm306_vm0 = vcmask (!%p239_p10), 64512   ;;  %v1201_v1 = vmov (!%p239_p10), 0   ;;  %v435_v2 = vld [vmem:[%s1437_s4 + $0x8] sm:$0xff] (!%p239_p10)  ;;  %vm313_vm1 = vcmask (!%p239_p10), 1043456  }
  0x11   : > { %242 = sbr.rel (%p239_p10) target bundleno = 911 (0x38f), region = 44  ;;  %980 = vmatprep.mubr.msk.bf16.mxu0 (!%p239_p10), %vm306_vm0, %v1097_v0  ;;  %1095 = vset.pattern.permute.xlu0 (!%p239_p10), %v1201_v1  ;;  %v434_v5 = vld [vmem:[%s1437_s4] sm:$0xff] (!%p239_p10)  ;;  %v1098_v9 = vld [vmem:[%s1436_s3 + $0x8] sm:$0xff] (!%p239_p10)   ;;  %v437_v11 = vld [vmem:[%s1437_s4 + $0x18] sm:$0xff] (!%p239_p10)  ;;  %v1202_v41 = vmov (!%p239_p10), 0.0   ;;  %vm1203_vm2 = vmmov (!%p239_p10), 0  }
  0x12   : > { %445 = vperm.xlu0 (!%p239_p10), %1095, %v435_v2   ;;  %v1099_v10 = vld [vmem:[%s1435_s2] sm:$0xff] (!%p239_p10)   ;;  %v1100_v13 = vld [vmem:[%s1435_s2 + $0x8] sm:$0xff] (!%p239_p10)   ;;  %v436_v27 = vld [vmem:[%s1437_s4 + $0x10] sm:$0xff] (!%p239_p10)  ;;  %s809_s21 = sld [smem:[#allocation5]] (!%p239_p10)  ;;  %s268_s22 = sand.u32 (!%p239_p10), 1, %s1183_s24  }
  0x13   : > { %s953_s9 = sshll.u32 (!%p239_p10), %s1191_s26, 8  ;;  %s1204_s16 = smov (!%p239_p10), [#allocation6]  }
  0x14   : > { %s1125_s17 = sshll.u32 (!%p239_p10), %s1204_s16, 4  ;;  %s1126_s17 = int_to_ptr.vmem [resolvable:$false] %s1125_s17 }
  0x15   : > { %s1127_s18 = scalar_lea.vmem (!%p239_p10), %s1126_s17, 512 }
  0x16   : > { %440 = vperm.xlu0 (!%p239_p10), %1095, %v434_v5  }
  0x18   : > { %s272_s14 = scalar_select %p271_p11, %s1191_s26, 1 }
  0x1a   : > { %s930_s15 = sshll.u32 %s272_s14, 3  ;;  %455 = vperm.xlu0 %1095, %v437_v11   ;;  %s1385_s14 = scalar_lea.hbm %s1439_s6, %s953_s9 }
  0x1b   : > { %s274_s20 = scalar_lea.vmem %s1433_s0, %s930_s15  ;;  %s278_s5 = scalar_lea.vmem %s1434_s1, %s930_s15 }
  0x1c   : > { %v1315_v3 = vld [vmem:[%s274_s20] sm:$0xff]  ;;  %s1387_s15 = scalar_lea.sflag [#allocation7], %s268_s22 }
  0x1d   : > { %v1317_v4 = vld [vmem:[%s278_s5] sm:$0xff]  ;;  %v285_v6 = vpack.c.bf16 %v1315_v3, %v1315_v3  ;;  %s929_s5 = sshll.u32 %s268_s22, 4 }
  0x1e   : > { %v287_v7 = vpack.c.bf16 %v1317_v4, %v1317_v4  ;;  %s270_s29 = scalar_lea.vmem [#allocation6], %s929_s5 }
  0x1f   : > { %v383_v12 = vsel %vm313_vm1, %v285_v6, 0  ;;  %s836_s7 = sshll.u32 %s270_s29, 4  ;;  %s1379_s7 = int_to_ptr.vmem [resolvable:$true] %s836_s7 }
  0x20   : > { %1032 = vmatprep.subr.msk.bf16.mxu0 %vm313_vm1, %v287_v7  ;;  %v315_v8 = vsel %vm313_vm1, %v287_v7, 0  ;;  %s1121_s26 = scalar_lea.vmem %s1379_s7, 256  ;;  %p1128_p1 = scmp.lt.s32.totalorder %s1379_s7, %s1126_s17 }
  0x21   : > { %979 = vmatpush3.bf16.msra.mxu0 %v315_v8  ;;  %p1122_p12 = scmp.ne.s32.totalorder %s1379_s7, %s1121_s26  ;;  %p1129_p2 = scmp.lt.s32.totalorder %s1127_s18, %s1121_s26 }
  0x22   : > { %1033 = vmatprep.subr.msk.bf16.mxu0 %vm313_vm1, %v285_v6 }
  0x23   : > { %p1123_p13 = pnand %p1122_p12, %p1285_p4  ;;  %p1130_p3 = por %p1129_p2, %p1128_p1 }
  0x24   : > { %981 = vmatmul.mubr.msk.bf16.vlgmr.msra.gmra.mrb[0].mxu0 %vm306_vm0, %v1098_v9 }
  0x25   : > { %985 = vmatpush3.bf16.msra.mxu0 %v383_v12  ;;  %986 = vmatprep.mubr.msk.bf16.mxu0 %vm306_vm0, %v1099_v10  ;;  %p1124_p0 = pneg %p1123_p13 }
  0x27   : > { %p1131_p5 = pnand %p1130_p3, %p1124_p0 }
  0x30   : > { %987 = vmatmul.mubr.msk.bf16.vlgmr.msra.gmra.mrb[0].mxu0 %vm306_vm0, %v1100_v13 }
  0x91   : > { %v446_v14 = vpop.permute.xlu0 %445 }
  0x95   : > { %v441_v16 = vpop.permute.xlu0 %440 }
  0x99   : > { %v456_v36 = vpop.permute.xlu0 %455 }
 0x103   : > { %v988_v15 = vpop.f32.mrb[0].mxu0 }
 0x104   : > { %v419_v17 = vpop.f32.mrb[1].mxu0 }
 0x105   : > { %v458_v18 = vadd.f32 %v441_v16, %v419_v17  ;;  %v989_v19 = vpop.f32.mrb[2].mxu0 }
 0x106   : > { %v422_v20 = vpop.f32.mrb[3].mxu0  ;;  %v1358_v38 = vadd.f32 %v989_v19, %v456_v36 }
 0x107   : > { %v462_v21 = vpack.c.bf16 %v458_v18, %v458_v18  ;;  %v459_v22 = vadd.f32 %v446_v14, %v422_v20 }
 0x109   : > { %463 = vst [vmem:[#allocation2] sm:$0xf] %v462_v21  ;;  %v464_v23 = vpack.c.bf16 %v459_v22, %v459_v22 }
 0x10b   : > { %465 = vst [vmem:[#allocation3] sm:$0xf] %v464_v23 }
 0x110   : > { %v473_v24 = vld [vmem:[#allocation2] sm:$0xf] }
 0x111   : > { %1034 = vmatprep.subr.msk.bf16.mxu1 %vm313_vm1, %v473_v24  ;;  %v518_v25 = vsel %vm313_vm1, %v473_v24, 0 }
 0x112   : > { %991 = vmatpush3.bf16.msra.mxu1 %v518_v25  ;;  %v474_v26 = vld [vmem:[#allocation3] sm:$0xf] }
 0x113   : > { %475 = vxpose.xlu1.c.b16.start.end [1/1] (short) %v474_v26, 128  ;;  %1008 = vmatprep.subr.bf16.mxu1 %v1202_v41 }
 0x117   : > { %1096 = vset.pattern.permute.xlu1 %v1201_v1 }
 0x133   : > { %450 = vperm.xlu1 %1096, %v436_v27  }
 0x179   : > { %v483_v28 = vpop.trf.xlu1 }
 0x17a   : > { %992 = vmatprep.mubr.msk.bf16.mxu1 %vm306_vm0, %v483_v28 }
 0x17d   : > { %v484_v29 = vpop.trf.xlu1 }
 0x17e   : > { %993 = vmatmul.mubr.msk.bf16.vlgmr.msra.gmra.mrb[0].mxu1 %vm306_vm0, %v484_v29 }
 0x181   : > { %v485_v30 = vpop.trf.xlu1 }
 0x182   : > { %996 = vmatprep.mubr.msk.bf16.mxu1 %vm306_vm0, %v485_v30 }
 0x185   : > { %v486_v31 = vpop.trf.xlu1 }
 0x186   : > { %997 = vmatmul.mubr.msk.bf16.gmra.mrb[4].mxu1 %vm306_vm0, %v486_v31 }
 0x189   : > { %v487_v32 = vpop.trf.xlu1 }
 0x18a   : > { %1000 = vmatprep.mubr.msk.bf16.mxu1 %vm306_vm0, %v487_v32 }
 0x18d   : > { %v488_v33 = vpop.trf.xlu1 }
 0x18e   : > { %1001 = vmatmul.mubr.msk.bf16.gmra.mrb[8].mxu1 %vm306_vm0, %v488_v33 }
 0x191   : > { %v489_v34 = vpop.trf.xlu1 }
 0x192   : > { %1004 = vmatprep.mubr.msk.bf16.mxu1 %vm306_vm0, %v489_v34 }
 0x195   : > { %v490_v35 = vpop.trf.xlu1 }
 0x196   : > { %1005 = vmatmul.mubr.msk.bf16.gmra.mrb[12].mxu1 %vm306_vm0, %v490_v35 }
 0x197   : > { %1024 = vmatprep.mubr.msk.bf16.mxu1 %vm1203_vm2, %v1202_v41 }
 0x1b2   : > { %v451_v37 = vpop.permute.xlu1 %450 }
 0x1b3   : > { %v1360_v39 = vadd.f32 %v988_v15, %v451_v37 }
 0x1b5   : > { %v466_v40 = vpack.c.bf16 %v1358_v38, %v1360_v39 }
 0x251   : > { %v994_v42 = vpop.f32.mrb[0].mxu1 }
 0x252   : > { %v554_v43 = vpop.f32.mrb[1].mxu1 }
 0x253   : > { %v995_v44 = vpop.f32.mrb[2].mxu1 }
 0x254   : > { %v557_v45 = vpop.f32.mrb[3].mxu1 }
 0x259   : > { %v998_v46 = vpop.f32.mrb[4].mxu1 }
 0x25a   : > { %v668_v47 = vmax.f32 %v994_v42, %v998_v46  ;;  %v570_v48 = vpop.f32.mrb[5].mxu1 }
 0x25b   : > { %v666_v49 = vmax.f32 %v554_v43, %v570_v48  ;;  %v999_v50 = vpop.f32.mrb[6].mxu1 }
 0x25c   : > { %v672_v51 = vmax.f32 %v668_v47, -1e+30  ;;  %v669_v52 = vmax.f32 %v995_v44, %v999_v50  ;;  %v573_v53 = vpop.f32.mrb[7].mxu1 }
 0x25d   : > { %v670_v54 = vmax.f32 %v666_v49, -1e+30  ;;  %v667_v55 = vmax.f32 %v557_v45, %v573_v53 }
 0x25e   : > { %v673_v56 = vmax.f32 %v669_v52, -1e+30  ;;  %v676_v58 = vmax.f32 %v672_v51, -1e+30 }
 0x25f   : > { %v671_v57 = vmax.f32 %v667_v55, -1e+30  ;;  %v674_v60 = vmax.f32 %v670_v54, -1e+30 }
 0x260   : > { %v677_v59 = vmax.f32 %v673_v56, -1e+30 }
 0x261   : > { %v675_v61 = vmax.f32 %v671_v57, -1e+30  ;;  %v1002_v62 = vpop.f32.mrb[8].mxu1 }
 0x262   : > { %v679_v63 = vmax.f32 %v676_v58, %v677_v59  ;;  %v586_v0 = vpop.f32.mrb[9].mxu1 }
 0x263   : > { %v678_v1 = vmax.f32 %v674_v60, %v675_v61  ;;  %v1003_v2 = vpop.f32.mrb[10].mxu1 }
 0x264   : > { %v589_v5 = vpop.f32.mrb[11].mxu1 }
 0x265   : > { %v680_v6 = vmax.f32 %v678_v1, %v679_v63 }
 0x267   : > { %v681_v7 = vrot.slane %v680_v6, 4 }
 0x269   : > { %v682_v8 = vmax.f32 %v680_v6, %v681_v7  ;;  %v1006_v9 = vpop.f32.mrb[12].mxu1 }
 0x26a   : > { %v602_v10 = vpop.f32.mrb[13].mxu1 }
 0x26b   : > { %v683_v11 = vrot.slane %v682_v8, 2  ;;  %v1007_v12 = vpop.f32.mrb[14].mxu1 }
 0x26c   : > { %v605_v13 = vpop.f32.mrb[15].mxu1 }
 0x26d   : > { %v684_v14 = vmax.f32 %v682_v8, %v683_v11 }
 0x26f   : > { %v685_v15 = vrot.slane %v684_v14, 1 }
 0x271   : > { %v686_v16 = vmax.f32 %v684_v14, %v685_v15 }
 0x273   : > { %v687_v17 = vsub.f32 %v554_v43, %v686_v16  ;;  %v688_v18 = vsub.f32 %v557_v45, %v686_v16  ;;  %v689_v19 = vsub.f32 %v994_v42, %v686_v16  ;;  %v690_v20 = vsub.f32 %v995_v44, %v686_v16 }
 0x274   : > { %v691_v21 = vsub.f32 %v570_v48, %v686_v16  ;;  %v692_v22 = vsub.f32 %v573_v53, %v686_v16  ;;  %v693_v23 = vsub.f32 %v998_v46, %v686_v16  ;;  %v694_v24 = vsub.f32 %v999_v50, %v686_v16 }
 0x275   : > { %v703_v25 = vmul.f32 1.442695, %v687_v17  ;;  %v705_v26 = vmul.f32 1.442695, %v688_v18  ;;  %v707_v27 = vmul.f32 1.442695, %v689_v19 }
 0x276   : > { %v709_v28 = vmul.f32 1.442695, %v690_v20  ;;  %v711_v29 = vmul.f32 1.442695, %v691_v21  ;;  %v713_v30 = vmul.f32 1.442695, %v692_v22 }
 0x277   : > { %1101 = vpow2.f32 %v703_v25  ;;  %v715_v31 = vmul.f32 1.442695, %v693_v23  ;;  %v717_v32 = vmul.f32 1.442695, %v694_v24  ;;  %v695_v33 = vsub.f32 -1e+30, %v686_v16 }
 0x278   : > { %1103 = vpow2.f32 %v705_v26 }
 0x279   : > { %1105 = vpow2.f32 %v707_v27  ;;  %v719_v36 = vmul.f32 1.442695, %v695_v33 }
 0x27a   : > { %1107 = vpow2.f32 %v709_v28 }
 0x27b   : > { %1109 = vpow2.f32 %v711_v29 }
 0x27c   : > { %1111 = vpow2.f32 %v713_v30 }
 0x27d   : > { %1113 = vpow2.f32 %v715_v31 }
 0x27e   : > { %1115 = vpow2.f32 %v717_v32 }
 0x27f   : > { %1117 = vpow2.f32 %v719_v36 }
 0x281   : > { %v1102_v34 = vpop.eup %1101 }
 0x282   : > { %v1104_v35 = vpop.eup %1103 }
 0x283   : > { %v1106_v37 = vpop.eup %1105  ;;  %v735_v42 = vadd.f32 %v1104_v35, %v1102_v34  ;;  %v757_v43 = vpack.c.bf16 %v1104_v35, %v1102_v34 }
 0x284   : > { %v1108_v44 = vpop.eup %1107 }
 0x285   : > { %v1110_v45 = vpop.eup %1109  ;;  %v736_v46 = vadd.f32 %v1106_v37, %v735_v42  ;;  %1009 = vmatpush3.bf16.msra.mxu1 %v757_v43  ;;  %v758_v47 = vpack.c.bf16 %v1108_v44, %v1106_v37 }
 0x286   : > { %v1112_v48 = vpop.eup %1111  ;;  %1010 = vmatprep.subr.bf16.mxu1 %v1202_v41 }
 0x287   : > { %v1114_v49 = vpop.eup %1113  ;;  %v737_v50 = vadd.f32 %v1108_v44, %v736_v46  ;;  %v759_v51 = vpack.c.bf16 %v1112_v48, %v1110_v45 }
 0x288   : > { %v1116_v52 = vpop.eup %1115 }
 0x289   : > { %v738_v53 = vadd.f32 %v1110_v45, %v737_v50  ;;  %1011 = vmatpush3.bf16.msra.mxu1 %v758_v47  ;;  %v760_v54 = vpack.c.bf16 %v1116_v52, %v1114_v49  ;;  %v1118_v58 = vpop.eup %1117 }
 0x28a   : > { %1012 = vmatprep.subr.bf16.mxu1 %v1202_v41  ;;  %v761_v61 = vpack.c.bf16 %v1118_v58, %v1118_v58 }
 0x28b   : > { %v739_v55 = vadd.f32 %v1112_v48, %v738_v53 }
 0x28d   : > { %v740_v56 = vadd.f32 %v1114_v49, %v739_v55  ;;  %1013 = vmatpush3.bf16.msra.mxu1 %v759_v51 }
 0x28e   : > { %1014 = vmatprep.subr.bf16.mxu1 %v1202_v41 }
 0x28f   : > { %v741_v57 = vadd.f32 %v1116_v52, %v740_v56 }
 0x291   : > { %v742_v59 = vadd.f32 %v1118_v58, %v741_v57  ;;  %1015 = vmatpush3.bf16.msra.mxu1 %v760_v54 }
 0x292   : > { %1016 = vmatprep.subr.bf16.mxu1 %v1202_v41 }
 0x293   : > { %v743_v60 = vadd.f32 %v1118_v58, %v742_v59 }
 0x295   : > { %v744_v62 = vadd.f32 %v1118_v58, %v743_v60  ;;  %1017 = vmatpush3.bf16.msra.mxu1 %v761_v61 }
 0x296   : > { %1018 = vmatprep.subr.bf16.mxu1 %v1202_v41 }
 0x297   : > { %v745_v63 = vadd.f32 %v1118_v58, %v744_v62 }
 0x299   : > { %1019 = vmatpush3.bf16.msra.mxu1 %v761_v61  ;;  %v746_v0 = vadd.f32 %v1118_v58, %v745_v63 }
 0x29a   : > { %1020 = vmatprep.subr.bf16.mxu1 %v1202_v41 }
 0x29b   : > { %v747_v1 = vadd.f32 %v1118_v58, %v746_v0 }
 0x29d   : > { %1021 = vmatpush3.bf16.msra.mxu1 %v761_v61  ;;  %v748_v2 = vadd.f32 %v1118_v58, %v747_v1 }
 0x29e   : > { %1022 = vmatprep.subr.bf16.mxu1 %v1202_v41  ;;  %v810_v41 = vstv %s809_s21 }
 0x29f   : > { %v749_v5 = vadd.f32 %v1118_v58, %v748_v2 }
 0x2a1   : > { %1023 = vmatpush3.bf16.msra.mxu1 %v761_v61  ;;  %v750_v6 = vrot.slane %v749_v5, 4 }
 0x2a3   : > { %v751_v7 = vadd.f32 %v750_v6, %v749_v5 }
 0x2a4   : > { %1025 = vmatmul.mubr.bf16.vlgmr.msra.gmra.mrb[16].mxu1 %v466_v40 }
 0x2a5   : > { %v752_v8 = vrot.slane %v751_v7, 2 }
 0x2a7   : > { %v753_v9 = vadd.f32 %v752_v8, %v751_v7 }
 0x2a9   : > { %v754_v10 = vrot.slane %v753_v9, 1 }
 0x2ab   : > { %v755_v11 = vadd.f32 %v754_v10, %v753_v9 }
 0x2ad   : > { %1119 = vrcp.f32 %v755_v11 }
 0x2b7   : > { %v1120_v12 = vpop.eup %1119 }
 0x377   : > { %v799_v13 = vpop.f32.mrb[16].mxu1 }
 0x378   : > { %v807_v14 = vmul.f32 %v1120_v12, %v799_v13  ;;  %v1026_v15 = vpop.f32.mrb[17].mxu1 }
 0x379   : > { %v802_v16 = vpop.f32.mrb[18].mxu1 }
 0x37a   : > { %v811_v17 = vmul.f32 %v810_v41, %v807_v14  ;;  %v808_v38 = vmul.f32 %v1120_v12, %v802_v16  ;;  %v1027_v39 = vpop.f32.mrb[19].mxu1 }
 0x37c   : > { %v815_v40 = vadd.f32 %v811_v17, %v1315_v3  ;;  %v812_v18 = vmul.f32 %v810_v41, %v808_v38 }
 0x37e   : > { %816 = vst [vmem:[%s270_s29] sm:$0xff] %v815_v40  ;;  %v819_v19 = vadd.f32 %v812_v18, %v1317_v4 }
 0x380   : > { %820 = vst [vmem:[%s270_s29 + $0x8] sm:$0xff] %v819_v19 }
 0x381   : > { %1134 = shalt.err (!%p1131_p5)
}
 0x382   : > { %s1135_s19 = scalar_lea.hbm %s1385_s14, 256  ;;  %s1139_s22 = scalar_lea.hbm %s1439_s6, 512 }
 0x383   : > { %p1136_p6 = scmp.ne.s32.totalorder %s1385_s14, %s1135_s19  ;;  %p1140_p10 = scmp.lt.u32.totalorder %s1385_s14, %s1439_s6 }
 0x384   : > { %p1141_p11 = scmp.lt.u32.totalorder %s1139_s22, %s1135_s19  ;;  %p1143_p13 = scmp.lt.u32.totalorder %s1135_s19, %s1385_s14 }
 0x385   : > { %p1137_p7 = pnand %p1136_p6, %p1285_p4 }
 0x386   : > { %p1142_p12 = por %p1141_p11, %p1140_p10 }
 0x387   : > { %p1138_p9 = pneg %p1137_p7 }
 0x388   : > { %p1144_p0 = por %p1143_p13, %p1142_p12 }
 0x38a   : > { %p1145_p1 = pnand %p1144_p0, %p1138_p9 }
 0x38c   : > { %1148 = shalt.err (!%p1145_p1)
}
 0x38d   : > { %s1205_s9 = smov 128   ;;  %s1206_s12 = smov 8  }
 0x38e   : > { %1035 = dma.vmem_to_hbm [thread:$0]  (%p1285_p4), %s1379_s7, 256, %s1385_s14, %s1387_s15, %s1205_s9, %s1205_s9, %s1206_s12  }
 0x38f PF: > { %p1041_p2 = scmp.ge.s32.totalorder %s1199_s28, 2  ;;  %s851_s13 = sand.u32 1, %s1179_s23  }
 0x390   : > { %s852_s26 = scalar_lea.sflag [#allocation7], %s851_s13 }
 0x391   : > { %p1038_p3 = pnand %p1041_p2, %p1292_p8 }
 0x393   : > { %1174 = dma.done.wait (!%p1038_p3), %s852_s26, 256  }
 0x394   : > { %1176 = vsyncadd (!%p1038_p3), %s852_s26, 4294967040  ;;  %s20_s28 = sadd.s32 1, %s1199_s28   ;;  %s1442_s23 = smov %s1183_s24 }
 0x395   : > { %p17_p5 = scmp.ge.s32.totalorder %s20_s28, 4   ;;  %s1443_s24 = smov %s1187_s25 }
 0x396   : > { %s1444_s25 = smov %s1298_s11  ;;  %s1445_s26 = smov %s1195_s27 }
 0x397   : > { %s1446_s27 = smov %s1448_s30  ;;  %19 = sbr.rel (!%p17_p5) target bundleno = 6 (0x6), region = 89 }
 0x39e   :  { %857 = vsyncpa [#allocation7], 1 }
 0x39f   :  { %859 = vsyncpa [#allocation7 + $0x1], 1 }

</bundles_post_ra>
